<compile_context>
chip_gen: v7x
topology: tpu7x:2x2x1
jax: 0.10.0
libtpu: 0.0.40
codegen_flags: <defaults>
</compile_context>

<pallas_src>
import jax
import jax.numpy as jnp
from jax import lax
from jax.experimental import pallas as pl
from jax.experimental.pallas import tpu as pltpu


def churn_kernel(x_ref, w1_ref, b1_ref, w3_ref, b3_ref, o_ref):
    # Cast x to bf16 only for the MXU operand (in-kernel, no extra HBM pass).
    x = x_ref[...].astype(jnp.bfloat16)
    # fc1 with BatchNorm folded in: bf16 MXU matmul, f32 accumulation.
    h = jnp.dot(x, w1_ref[...], preferred_element_type=jnp.float32)
    h = h + b1_ref[...]                      # folded fc1 bias + BN shift (f32)
    # LeakyReLU (negative_slope=0.01): exact for slope in (0,1), single VALU op.
    h = jnp.maximum(h, 0.01 * h)
    # Dropout(p=0.3) -> identity at inference.
    # fc3 (128 -> 1) as a lane-dense MXU contraction: (1,H) . (TB,H)^T -> (1,TB).
    o = lax.dot_general(
        w3_ref[...], h,
        dimension_numbers=(((1,), (1,)), ((), ())),
        preferred_element_type=jnp.float32,
    )
    o_ref[...] = (o + b3_ref[...]).astype(o_ref.dtype)


def churn_forward(x, params):
    w1, b1, gamma, beta, run_mean, run_var, w3, b3 = params
    eps = 1e-5  # PyTorch BatchNorm1d default

    # ---- host-side (plain JAX) folding of BatchNorm into fc1 ----
    scale = gamma / jnp.sqrt(run_var + eps)                            # (H,)
    shift = beta - run_mean * scale                                    # (H,)
    w1_folded = (w1 * scale[None, :]).astype(jnp.bfloat16)             # (D, H) MXU operand
    b_folded = (b1 * scale + shift).reshape(1, -1).astype(jnp.float32)  # (1, H)

    B, D = x.shape
    H = w1.shape[1]   # 128
    O = w3.shape[1]   # 1

    w3_row = w3.reshape(1, H).astype(jnp.float32)      # (1, H) fc3 weight row
    b3_2d = b3.reshape(1, O).astype(jnp.float32)       # (1, 1)

    # ---- batch tiling ----
    # VMEM budget (v7x-safe, 32 MiB scoped): x tile is lane-padded to 128 lanes,
    # so per batch row ~ 2*128*4 (double-buffered x) + 128*4 (f32 h) + cast temps
    # ~= 2 KiB/row -> TB=8192 ~ 20 MiB.  Large B gives n_tiles >= 2 so the
    # "parallel" axis keeps both v7x TensorCores busy.
    TB_MAX = 8192
    if B <= TB_MAX:
        TB = ((B + 7) // 8) * 8            # round up to sublane multiple
    else:
        TB = TB_MAX
    n_tiles = pl.cdiv(B, TB)

    cost = pl.CostEstimate(
        flops=2 * B * D * H + 2 * B * H,                       # fc1 + fc3
        bytes_accessed=B * D * 4 + D * H * 2 + B * 4 + H * 12,  # x stream + weights + out
        transcendentals=0,
    )

    out = pl.pallas_call(
        churn_kernel,
        out_shape=jax.ShapeDtypeStruct((n_tiles, TB), jnp.float32),
        grid=(n_tiles,),
        in_specs=[
            pl.BlockSpec((TB, D), lambda i: (i, 0)),   # x: streamed per batch tile
            pl.BlockSpec((D, H), lambda i: (0, 0)),    # folded fc1 weights (resident)
            pl.BlockSpec((1, H), lambda i: (0, 0)),    # folded bias (resident)
            pl.BlockSpec((1, H), lambda i: (0, 0)),    # fc3 weight row (resident)
            pl.BlockSpec((1, O), lambda i: (0, 0)),    # fc3 bias (resident)
        ],
        out_specs=pl.BlockSpec((1, TB), lambda i: (i, 0)),  # lane-dense output row
        compiler_params=pltpu.CompilerParams(
            dimension_semantics=("parallel",),         # shard batch across v7x's 2 TCs
            vmem_limit_bytes=32 * 1024 * 1024,
        ),
        cost_estimate=cost,
    )(x, w1_folded, b_folded, w3_row, b3_2d)

    # (n_tiles, TB) lane-dense layout -> (B, 1); tail rows past B (from the ragged
    # final tile's unspecified padded reads) are sliced off and never reduced over.
    return out.reshape(-1)[:B].reshape(B, O)


def init_params(key, input_dim):
    k1, k2, k3, k4 = jax.random.split(key, 4)
    # Deterministic synthetic init (shapes match the PyTorch module).
    w1 = jax.random.normal(k1, (input_dim, 128), jnp.float32) * 0.1   # fc1.weight.T
    b1 = jax.random.normal(k2, (128,), jnp.float32) * 0.1             # fc1.bias
    gamma = jnp.ones((128,), jnp.float32)                              # bn1.weight
    beta = jnp.zeros((128,), jnp.float32)                              # bn1.bias
    run_mean = jnp.zeros((128,), jnp.float32)                          # bn1.running_mean
    run_var = jnp.ones((128,), jnp.float32)                            # bn1.running_var
    w3 = jax.random.normal(k3, (128, 1), jnp.float32) * 0.1            # fc3.weight.T
    b3 = jax.random.normal(k4, (1,), jnp.float32) * 0.1                # fc3.bias
    return (w1, b1, gamma, beta, run_mean, run_var, w3, b3)


if __name__ == "__main__":
    key = jax.random.PRNGKey(0)
    kx, kp = jax.random.split(key)

    batch, input_dim = 8, 32
    x = jax.random.normal(kx, (batch, input_dim), jnp.float32)
    params = init_params(kp, input_dim)

    out = churn_forward(x, params)
    out = jax.block_until_ready(out)

    # Pure-JAX f32 reference for a sanity check (bf16 MXU inputs -> relaxed tol).
    w1, b1, gamma, beta, rm, rv, w3, b3 = params
    h = x @ w1 + b1
    h = (h - rm) / jnp.sqrt(rv + 1e-5) * gamma + beta
    h = jnp.where(h > 0, h, 0.01 * h)
    ref = h @ w3 + b3
    assert out.shape == (batch, 1)
    assert jnp.allclose(out, ref, atol=3e-2, rtol=3e-2)

    print("KERNEL_OK")
</pallas_src>

<mosaic_0001>
module attributes {stable_mosaic.version = 11 : i64} {
  func.func @churn_kernel(%arg0: i32, %arg1: memref<8x32xf32, #tpu.memory_space<vmem>>, %arg2: memref<32x128xbf16, #tpu.memory_space<vmem>>, %arg3: memref<1x128xf32, #tpu.memory_space<vmem>>, %arg4: memref<1x128xf32, #tpu.memory_space<vmem>>, %arg5: memref<1x1xf32, #tpu.memory_space<vmem>>, %arg6: memref<1x8xf32, #tpu.memory_space<vmem>>) attributes {dimension_semantics = [#tpu.dimension_semantics<parallel>], iteration_bounds = array<i64: 1>, scalar_prefetch = 0 : i64, scratch_operands = 0 : i64, tpu.core_type = #tpu.core_type<tc>, window_params = [{transform_indices = @transform_0, window_bounds = array<i64: 8, 32>}, {pipeline_mode = #tpu.pipeline_mode<synchronous>, transform_indices = @transform_1, window_bounds = array<i64: 32, 128>}, {pipeline_mode = #tpu.pipeline_mode<synchronous>, transform_indices = @transform_2, window_bounds = array<i64: 1, 128>}, {pipeline_mode = #tpu.pipeline_mode<synchronous>, transform_indices = @transform_3, window_bounds = array<i64: 1, 128>}, {pipeline_mode = #tpu.pipeline_mode<synchronous>, transform_indices = @transform_4, window_bounds = array<i64: 1, 1>}, {transform_indices = @transform_5, window_bounds = array<i64: 1, 8>}]} {
    %c0 = arith.constant 0 : index
    %c0_0 = arith.constant 0 : index
    %0 = vector.load %arg1[%c0, %c0_0] : memref<8x32xf32, #tpu.memory_space<vmem>>, vector<8x32xf32>
    %1 = arith.truncf %0 : vector<8x32xf32> to vector<8x32xbf16>
    %c0_1 = arith.constant 0 : index
    %c0_2 = arith.constant 0 : index
    %2 = vector.load %arg2[%c0_1, %c0_2] : memref<32x128xbf16, #tpu.memory_space<vmem>>, vector<32x128xbf16>
    %cst = arith.constant dense<0.000000e+00> : vector<8x128xf32>
    %3 = tpu.matmul %1, %2, %cst {dimension_numbers = #tpu.dot_dimension_numbers<[1], [0], [0], [1], [0, 0, 1, 1], [], []>} : vector<8x32xbf16>, vector<32x128xbf16>, vector<8x128xf32> -> vector<8x128xf32>
    %c0_3 = arith.constant 0 : index
    %c0_4 = arith.constant 0 : index
    %4 = vector.load %arg3[%c0_3, %c0_4] : memref<1x128xf32, #tpu.memory_space<vmem>>, vector<1x128xf32>
    %5 = vector.broadcast %4 : vector<1x128xf32> to vector<8x128xf32>
    %6 = arith.addf %3, %5 : vector<8x128xf32>
    %cst_5 = arith.constant 0.00999999977 : f32
    %7 = vector.broadcast %cst_5 : f32 to vector<8x128xf32>
    %8 = arith.mulf %7, %6 : vector<8x128xf32>
    %9 = arith.maximumf %6, %8 : vector<8x128xf32>
    %c0_6 = arith.constant 0 : index
    %c0_7 = arith.constant 0 : index
    %10 = vector.load %arg4[%c0_6, %c0_7] : memref<1x128xf32, #tpu.memory_space<vmem>>, vector<1x128xf32>
    %cst_8 = arith.constant dense<0.000000e+00> : vector<1x8xf32>
    %11 = tpu.matmul %10, %9, %cst_8 {dimension_numbers = #tpu.dot_dimension_numbers<[1], [1], [0], [0], [0, 0, 1, 0], [], []>} : vector<1x128xf32>, vector<8x128xf32>, vector<1x8xf32> -> vector<1x8xf32>
    %c0_9 = arith.constant 0 : index
    %c0_10 = arith.constant 0 : index
    %12 = vector.load %arg5[%c0_9, %c0_10] : memref<1x1xf32, #tpu.memory_space<vmem>>, vector<1x1xf32>
    %13 = vector.broadcast %12 : vector<1x1xf32> to vector<1x8xf32>
    %14 = arith.addf %11, %13 : vector<1x8xf32>
    %c0_11 = arith.constant 0 : index
    %c0_12 = arith.constant 0 : index
    %15 = vector.load %arg6[%c0_11, %c0_12] : memref<1x8xf32, #tpu.memory_space<vmem>>, vector<1x8xf32>
    tpu.vector_store %arg6[%c0_11, %c0_12], %14 {strides = array<i32>} : memref<1x8xf32, #tpu.memory_space<vmem>>, vector<1x8xf32>,
    return
  }
  func.func @transform_0(%arg0: i32) -> (i32, i32) {
    %c0_i32 = arith.constant 0 : i32
    %c0_i32_0 = arith.constant 0 : i32
    return %arg0, %c0_i32 : i32, i32
  }
  func.func @transform_1(%arg0: i32) -> (i32, i32) {
    %c0_i32 = arith.constant 0 : i32
    %c0_i32_0 = arith.constant 0 : i32
    %c0_i32_1 = arith.constant 0 : i32
    return %c0_i32, %c0_i32_0 : i32, i32
  }
  func.func @transform_2(%arg0: i32) -> (i32, i32) {
    %c0_i32 = arith.constant 0 : i32
    %c0_i32_0 = arith.constant 0 : i32
    %c0_i32_1 = arith.constant 0 : i32
    return %c0_i32, %c0_i32_0 : i32, i32
  }
  func.func @transform_3(%arg0: i32) -> (i32, i32) {
    %c0_i32 = arith.constant 0 : i32
    %c0_i32_0 = arith.constant 0 : i32
    %c0_i32_1 = arith.constant 0 : i32
    return %c0_i32, %c0_i32_0 : i32, i32
  }
  func.func @transform_4(%arg0: i32) -> (i32, i32) {
    %c0_i32 = arith.constant 0 : i32
    %c0_i32_0 = arith.constant 0 : i32
    %c0_i32_1 = arith.constant 0 : i32
    return %c0_i32, %c0_i32_0 : i32, i32
  }
  func.func @transform_5(%arg0: i32) -> (i32, i32) {
    %c0_i32 = arith.constant 0 : i32
    %c0_i32_0 = arith.constant 0 : i32
    return %arg0, %c0_i32 : i32, i32
  }
}

</mosaic_0001>

<bundles_post_ra>
// kernel: tpu_custom_call.1
= control target key start
LH: loop header
LB: loop body
LE: loop exit
PB: predicated region body
PF: predicated region fallthrough
CT: control target
= control target key end

     0   :  { %s415_s0 = inlined_call_operand.hbm [shape: f32[8,32], index: 0, kind: input, shape index: {}]   ;;  %s416_s1 = inlined_call_operand.hbm [shape: bf16[32,128], index: 1, kind: input, shape index: {}]   ;;  %s417_s2 = inlined_call_operand.vmem [shape: f32[1,128], index: 2, kind: input, shape index: {}]   ;;  %s418_s3 = inlined_call_operand.vmem [shape: f32[1,128], index: 3, kind: input, shape index: {}]   ;;  %s419_s4 = inlined_call_operand.<no memory space> [shape: f32[1,1], index: 4, kind: input, shape index: {}]   ;;  %s420_s5 = inlined_call_operand.hbm [shape: f32[1,8], index: 5, kind: output, shape index: {}]  }
   0x1   :  { %v10_v0 = vstv %s419_s4 }
   0x2   :  { %11 = vst [vmem:[#allocation2] sm:$0x1] %v10_v0 }
   0x3   :  { %12 = vsyncpa [#allocation4], 0 }
   0x4   :  { %13 = vsyncpa [#allocation7], 0 }
   0x5   :  { %14 = vsyncpa [#allocation5], 0  ;;  %s325_s20 = smov [#allocation3]   ;;  %s326_s22 = smov [#allocation6]  }
   0x6   :  { %s21_s21 = sshll.u32 %s325_s20, 4  ;;  %s30_s23 = sshll.u32 %s326_s22, 4  ;;  %s22_s21 = int_to_ptr.vmem [resolvable:$true] %s21_s21  ;;  %s366_s23 = int_to_ptr.vmem [resolvable:$true] %s30_s23 }
   0x7   :  { %s253_s26 = scalar_lea.hbm %s415_s0, 128 }
   0x8   :  { %p254_p0 = scmp.ne.s32.totalorder %s415_s0, %s253_s26  ;;  %p257_p1 = scmp.lt.u32.totalorder %s253_s26, %s415_s0 }
   0xa   :  { %p259_p2 = pnand %p257_p1, %p254_p0 }
   0xc   :  { %262 = shalt.err (!%p259_p2)
}
   0xd   :  { %s263_s30 = scalar_lea.vmem %s22_s21, 128  ;;  %p268_p4 = scmp.lt.s32.totalorder %s22_s21, %s22_s21 }
   0xe   :  { %p264_p3 = scmp.ne.s32.totalorder %s22_s21, %s263_s30  ;;  %p269_p5 = scmp.lt.s32.totalorder %s263_s30, %s263_s30 }
  0x10   :  { %p270_p6 = por %p269_p5, %p268_p4 }
  0x12   :  { %p271_p7 = pnand %p270_p6, %p264_p3 }
  0x14   :  { %274 = shalt.err (!%p271_p7)
}
  0x15   :  { %24 = dma.hbm_to_vmem [thread:$0]  %s415_s0, 128, %s22_s21, [#allocation4]  }
  0x16   :  { %s275_s10 = scalar_lea.hbm %s416_s1, 256 }
  0x17   :  { %p276_p8 = scmp.ne.s32.totalorder %s416_s1, %s275_s10  ;;  %p279_p9 = scmp.lt.u32.totalorder %s275_s10, %s416_s1 }
  0x19   :  { %p281_p10 = pnand %p279_p9, %p276_p8 }
  0x1b   :  { %284 = shalt.err (!%p281_p10)
}
  0x1c   :  { %s285_s15 = scalar_lea.vmem %s366_s23, 256  ;;  %p290_p12 = scmp.lt.s32.totalorder %s366_s23, %s366_s23 }
  0x1d   :  { %p286_p11 = scmp.ne.s32.totalorder %s366_s23, %s285_s15  ;;  %p291_p13 = scmp.lt.s32.totalorder %s285_s15, %s285_s15 }
  0x1f   :  { %p292_p0 = por %p291_p13, %p290_p12 }
  0x21   :  { %p293_p1 = pnand %p292_p0, %p286_p11 }
  0x23   :  { %296 = shalt.err (!%p293_p1)
}
  0x24   :  { %s327_s0 = smov 64   ;;  %s328_s16 = smov 4  }
  0x25   :  { %36 = dma.hbm_to_vmem [thread:$0]  %s416_s1, 256, %s366_s23, [#allocation7], %s327_s0, %s327_s0, %s328_s16  }
  0x26   :  { %319 = dma.done.wait [#allocation4], 128  }
  0x27   :  { %320 = vsyncadd [#allocation4], 4294967168 }
  0x28   :  { %321 = dma.done.wait [#allocation7], 256  }
  0x29   :  { %322 = vsyncadd [#allocation7], 4294967040  ;;  %v329_v1 = vmov 0.0   ;;  %vm330_vm0 = vmmov 0   ;;  %v251_v2 = vld [vmem:[#allocation6] sm:$0xff]   ;;  %v252_v3 = vld [vmem:[#allocation6 + $0x8] sm:$0xff]   ;;  %v128_v17 = vlaneseq }
  0x2a   :  { %229 = vmatprep.subr.bf16.mxu0 %v329_v1  ;;  %233 = vmatprep.mubr.msk.bf16.mxu0 %vm330_vm0, %v329_v1  ;;  %v50_v4 = vld [vmem:[#allocation3] sm:$0xff]  ;;  %vm75_vm1 = vcmask 261120   ;;  %v122_v6 = vld [vmem:[#allocation2] sm:$0x1]  ;;  %v331_v7 = vmov 0   ;;  %s332_s22 = smov [#allocation8]  }
  0x2b   :  { %237 = vmatprep.subr.mxu1 %v329_v1  ;;  %239 = vmatprep.mubr.msk.f32.mxu1 %vm330_vm0, %v329_v1  ;;  %v51_v5 = vpack.c.bf16 %v50_v4, %v50_v4  ;;  %v220_v8 = vld [vmem:[%s417_s2] ss:$0 sm:$0xff]  ;;  %v129_v18 = vshrl.u32 %v128_v17, 7  ;;  %s210_s2 = sshll.u32 %s332_s22, 4  ;;  %vm202_vm2 = vcmask 57344   ;;  %s211_s2 = int_to_ptr.vmem [resolvable:$true] %s210_s2 }
  0x2c   :  { %230 = vmatpush3.bf16.msra.mxu0 %v251_v2  ;;  %250 = vset.pattern.permute.xlu0 %v331_v7  ;;  %v121_v16 = vld [vmem:[%s418_s3] sm:$0x1]  ;;  %s297_s23 = scalar_lea.vmem %s211_s2, 16  ;;  %s301_s24 = scalar_lea.vmem %s211_s2, 32 }
  0x2d   :  { %231 = vmatprep.subr.bf16.mxu0 %v329_v1  ;;  %125 = vperm.xlu0 %250, %v122_v6   ;;  %v130_v19 = vsub.s32 0, %v129_v18  ;;  %p298_p2 = scmp.ne.s32.totalorder %s211_s2, %s297_s23  ;;  %p302_p3 = scmp.lt.s32.totalorder %s211_s2, %s211_s2 }
  0x2e   :  { %p303_p4 = scmp.lt.s32.totalorder %s301_s24, %s297_s23 }
  0x30   :  { %232 = vmatpush3.bf16.msra.mxu0 %v252_v3  ;;  %p304_p5 = por %p303_p4, %p302_p3 }
  0x32   :  { %p305_p6 = pnand %p304_p5, %p298_p2 }
  0x33   :  { %234 = vmatmul.mubr.msk.bf16.vlgmr.msra.gmra.mrb[0].mxu0 %vm75_vm1, %v51_v5 }
  0xac   :  { %v126_v20 = vpop.permute.xlu0 %125 }
  0xad   :  { %v131_v21 = vrot.slane %v126_v20, %v130_v19 }
 0x106   :  { %v113_v9 = vpop.f32.mrb[0].mxu0 }
 0x107   :  { %v114_v10 = vadd.f32 %v220_v8, %v113_v9  ;;  %v235_v11 = vpop.f32.mrb[1].mxu0 }
 0x108   :  { %v116_v12 = vpop.f32.mrb[2].mxu0 }
 0x109   :  { %v119_v13 = vmul.f32 0.01, %v114_v10  ;;  %v236_v14 = vpop.f32.mrb[3].mxu0 }
 0x10b   :  { %v120_v15 = vmax.f32 %v114_v10, %v119_v13 }
 0x10d   :  { %238 = vmatpush3.xpose.msra.mxu1 %v120_v15 }
 0x110   :  { %240 = vmatmul.mubr.f32.vlgmr.msra.gmra.mrb[0].mxu1 %v121_v16 }
 0x1e3   :  { %v198_v22 = vpop.f32.mrb[0].mxu1 }
 0x1e4   :  { %v199_v23 = vadd.f32 %v198_v22, %v131_v21  ;;  %v241_v24 = vpop.f32.mrb[1].mxu1 }
 0x1e6   :  { %203 = vst.msk [vmem:[#allocation8] sm:$0x1] %vm202_vm2, %v199_v23 }
 0x1e7   :  { %308 = shalt.err (!%p305_p6)
}
 0x1e8   :  { %s309_s26 = scalar_lea.hbm %s420_s5, 16 }
 0x1e9   :  { %p310_p7 = scmp.ne.s32.totalorder %s420_s5, %s309_s26  ;;  %p313_p8 = scmp.lt.u32.totalorder %s309_s26, %s420_s5 }
 0x1eb   :  { %p315_p9 = pnand %p313_p8, %p310_p7 }
 0x1ed   :  { %318 = shalt.err (!%p315_p9)
}
 0x1ee   :  { %213 = dma.vmem_to_hbm [thread:$0]  %s211_s2, 16, %s420_s5, [#allocation5]  }
 0x1ef   :  { %323 = dma.done.wait [#allocation5], 16  }
 0x1f0   :  { %324 = vsyncadd [#allocation5], 4294967280 }
 0x1f1   :  { %217 = vsyncpa [#allocation4], 1 }
 0x1f2   :  { %218 = vsyncpa [#allocation7], 1 }
 0x1f3   :  { %219 = vsyncpa [#allocation5], 1 }

</bundles_post_ra>
